<compile_context>
chip_gen: v7x
topology: tpu7x:2x2x1
jax: 0.10.0
libtpu: 0.0.40
codegen_flags: <defaults>
</compile_context>

<pallas_src>
import math

import jax
import jax.numpy as jnp
from jax.experimental import pallas as pl
from jax.experimental.pallas import tpu as pltpu


def _round_up(x, m):
    return ((x + m - 1) // m) * m


# ----------------------------------------------------------------------------
# Kernel 1: fused-linear projection + pre-scale (runs once, small)
#   hn0[i] = (feat[i] @ Wf) * norm[i]      -> bf16
# ----------------------------------------------------------------------------
def _project_scale_kernel(feat_ref, w_ref, norm_ref, out_ref):
    h = jnp.dot(feat_ref[...], w_ref[...], preferred_element_type=jnp.float32)
    out_ref[...] = (h * norm_ref[...]).astype(out_ref.dtype)


# ----------------------------------------------------------------------------
# Kernel 2: one propagation round
#   acc[i]  = sum_k A[i,k] @ hn[k]                        (bf16 MXU, f32 acc)
#   out[i]  = acc[i] * scale[i] + bias
# where hn is the already norm-scaled bf16 operand; scale = norm^2 for
# intermediate rounds (so out is directly the next round's hn) and scale =
# norm (+ fused bias) for the final round.
# grid = (row tiles [parallel], reduction tiles [arbitrary, last])
# ----------------------------------------------------------------------------
def _make_prop_kernel(tm, tk, resident_h):
    def prop_kernel(adj_ref, hn_ref, scale_ref, bias_ref, out_ref, acc_ref):
        kk = pl.program_id(1)

        @pl.when(kk == 0)
        def _init():
            acc_ref[...] = jnp.zeros_like(acc_ref)

        if resident_h:
            k0 = pl.multiple_of(kk * tk, tk)
            hk = hn_ref[pl.ds(k0, tk), :]          # bf16 slice of resident hn
        else:
            hk = hn_ref[...]                        # streamed (tk, opad) tile
        acc_ref[...] += jnp.dot(adj_ref[...], hk,
                                preferred_element_type=jnp.float32)

        @pl.when(kk == pl.num_programs(1) - 1)
        def _finalize():
            out_ref[...] = (acc_ref[...] * scale_ref[...]
                            + bias_ref[...]).astype(out_ref.dtype)

    return prop_kernel


# ----------------------------------------------------------------------------
# Wrapper
# ----------------------------------------------------------------------------
def sgc_layer2_forward(adj, feat, w1, b1, w2, b2, in_degrees=None, *,
                       k=2, tm=512, tk=2048, hn_resident=None):
    """adj: (N, N) with adj[v, u] = 1 iff edge u -> v (ideally already bf16),
    feat: (N, F), w1: (H, F), b1: (H,), w2: (O, H), b2: (O,).
    in_degrees: optional (N,) in-degree vector (pass it to avoid an extra
    full pass over adj).  Returns (N, O) float32.

    tm/tk: adjacency row/reduction tile sizes (auto-clamped for small graphs).
    hn_resident: force resident (True) / streamed (False) hn; None = auto.
    """
    n, f = feat.shape
    h_feats = w1.shape[0]
    o = w2.shape[0]
    assert w1.shape == (h_feats, f) and w2.shape == (o, h_feats)
    assert k >= 1  # TODO(synk): k=0 (no propagation) path not implemented
    assert tm % 16 == 0 and tk % 128 == 0, "tm must be 16-aligned, tk 128-aligned"

    opad = _round_up(o, 128)                       # lane-dense output width

    # Clamp tiles for small graphs so padding stays modest.
    npad0 = _round_up(n, 128)
    tm = min(tm, npad0)
    tk = min(tk, npad0)
    npad = _round_up(n, math.lcm(tm, tk))

    # --- VMEM budget / hn residency decision ---------------------------------
    try:
        vmem_cap = int(pltpu.get_tpu_info().vmem_capacity_bytes)
    except Exception:
        vmem_cap = 64 * 2 ** 20                    # conservative (v7x per-TC)
    cap = int(0.85 * vmem_cap)

    hn_resident_bytes = 2 * npad * opad * 2        # double-buffered bf16 hn
    if hn_resident is None:
        hn_resident = hn_resident_bytes <= int(0.35 * cap)

    # --- fused linear parameters (exact: no nonlinearity between fc1, fc2) ---
    wf = jnp.dot(w1.T.astype(jnp.float32), w2.T.astype(jnp.float32))   # (F, O)
    bf = jnp.dot(b1.astype(jnp.float32), w2.T.astype(jnp.float32)) \
        + b2.astype(jnp.float32)                                       # (O,)
    wf = jnp.pad(wf, ((0, 0), (0, opad - o)))
    bf = jnp.pad(bf, (0, opad - o)).reshape(1, opad)
    zero_bias = jnp.zeros((1, opad), jnp.float32)

    # --- degree normalization (prefer graph-provided in-degrees) -------------
    if in_degrees is None:
        # TODO(synk): ideally the caller supplies in_degrees; this is an extra
        # N^2 read handled by XLA outside the pipeline.
        in_degrees = jnp.sum(adj.astype(jnp.float32), axis=1)
    degs = jnp.maximum(in_degrees.astype(jnp.float32), 1.0)
    norm = jax.lax.rsqrt(degs).reshape(n, 1)        # deg^-1/2
    norm_sq = (1.0 / degs).reshape(n, 1)            # deg^-1  (norm applied twice)

    # --- padding (zero adj/feat pads keep the math exact; pad norms with 1) --
    if adj.dtype == jnp.bfloat16 and npad == n:
        adj_p = adj                                  # no out-of-pipeline copy
    else:
        # TODO(synk): for huge graphs pass adj pre-cast bf16 and tile-aligned
        # (or mask the ragged tail in-kernel) to avoid this N^2 copy.
        adj_p = jnp.pad(adj.astype(jnp.bfloat16),
                        ((0, npad - n), (0, npad - n)))
    feat_p = feat.astype(jnp.float32)
    if npad != n:
        feat_p = jnp.pad(feat_p, ((0, npad - n), (0, 0)))
    norm_p = jnp.pad(norm, ((0, npad - n), (0, 0)), constant_values=1.0)
    norm_sq_p = jnp.pad(norm_sq, ((0, npad - n), (0, 0)), constant_values=1.0)

    # --- projection + pre-scale: hn0 = (feat @ Wf) * norm  (bf16) ------------
    hn = pl.pallas_call(
        _project_scale_kernel,
        out_shape=jax.ShapeDtypeStruct((npad, opad), jnp.bfloat16),
        grid=(npad // tm,),
        in_specs=[pl.BlockSpec((tm, f), lambda i: (i, 0)),
                  pl.BlockSpec((f, opad), lambda i: (0, 0)),
                  pl.BlockSpec((tm, 1), lambda i: (i, 0))],
        out_specs=pl.BlockSpec((tm, opad), lambda i: (i, 0)),
        compiler_params=pltpu.CompilerParams(
            dimension_semantics=("parallel",)),
        cost_estimate=pl.CostEstimate(
            flops=2 * npad * f * opad, transcendentals=0,
            bytes_accessed=npad * f * 4 + f * opad * 4 + npad * opad * 2),
    )(feat_p, wf, norm_p)

    # --- k rounds of propagation ---------------------------------------------
    prop_kernel = _make_prop_kernel(tm, tk, hn_resident)
    if hn_resident:
        hn_spec = pl.BlockSpec((npad, opad), lambda i, kk: (0, 0))
        hn_bytes = hn_resident_bytes
        hn_hbm_bytes_per_round = npad * opad * 2
    else:
        hn_spec = pl.BlockSpec((tk, opad), lambda i, kk: (kk, 0))
        hn_bytes = 2 * tk * opad * 2
        hn_hbm_bytes_per_round = (npad // tm) * npad * opad * 2

    vmem_est = (2 * tm * tk * 2            # double-buffered bf16 adj tile
                + hn_bytes                 # hn operand (resident or streamed)
                + 2 * tm * 128 * 4         # scale tile (lane-padded to 128)
                + 2 * 8 * opad * 4         # bias tile (sublane-padded to 8)
                + 2 * tm * opad * 4        # output tile (f32 worst case)
                + tm * opad * 4)           # f32 accumulator scratch
    vmem_limit = int(min(cap, max(32 * 2 ** 20, int(1.5 * vmem_est))))

    def prop_round(hn_in, scale, bias_row, out_dtype):
        out_bytes = 4 if out_dtype == jnp.float32 else 2
        return pl.pallas_call(
            prop_kernel,
            out_shape=jax.ShapeDtypeStruct((npad, opad), out_dtype),
            grid=(npad // tm, npad // tk),
            in_specs=[
                pl.BlockSpec((tm, tk), lambda i, kk: (i, kk)),       # adj tile
                hn_spec,                                             # hn
                pl.BlockSpec((tm, 1), lambda i, kk: (i, 0)),         # scale
                pl.BlockSpec((1, opad), lambda i, kk: (0, 0)),       # bias
            ],
            out_specs=pl.BlockSpec((tm, opad), lambda i, kk: (i, 0)),
            scratch_shapes=[pltpu.VMEM((tm, opad), jnp.float32)],
            compiler_params=pltpu.CompilerParams(
                dimension_semantics=("parallel", "arbitrary"),
                vmem_limit_bytes=vmem_limit),
            cost_estimate=pl.CostEstimate(
                flops=2 * npad * npad * opad, transcendentals=0,
                bytes_accessed=npad * npad * 2 + hn_hbm_bytes_per_round
                + npad * opad * out_bytes + npad * 4),
        )(adj_p, hn_in, scale, bias_row)

    for r in range(k):
        last = (r == k - 1)
        hn = prop_round(hn,
                        norm_p if last else norm_sq_p,     # final: *norm ; else *norm^2 (-> next hn)
                        bf if last else zero_bias,
                        jnp.float32 if last else jnp.bfloat16)

    # TODO(synk): module's index_remove / optional norm callable / caching /
    # zero-in-degree check are DGL graph-bookkeeping features not implemented.
    return hn[:n, :o]


# ----------------------------------------------------------------------------
# Pure-JAX reference (mirrors the PyTorch forward exactly, in f32)
# ----------------------------------------------------------------------------
def _reference(adj, feat, w1, b1, w2, b2, in_deg, k=2):
    norm = jnp.maximum(in_deg.astype(jnp.float32), 1.0) ** -0.5
    norm = norm.reshape(-1, 1)
    h = feat.astype(jnp.float32)
    a = adj.astype(jnp.float32)
    for _ in range(k):
        h = h * norm
        h = a @ h
        h = h * norm
    x = h @ w1.T + b1
    return x @ w2.T + b2


if __name__ == "__main__":
    key = jax.random.PRNGKey(0)
    k_adj, k_feat, k_w1, k_w2, k_b2 = jax.random.split(key, 5)

    # Small synthetic graph / feature sizes consistent with the module.
    N = 200            # number of nodes (padded to 256 inside the wrapper)
    IN_FEATS = 16
    HIDDEN_FEATS = 32
    OUT_FEATS = 8

    # Deterministic random adjacency with self-loops (no zero in-degree),
    # stored directly in bf16 (0/1 is exact) so the kernel gets it natively.
    adj = (jax.random.uniform(k_adj, (N, N)) < 0.15).astype(jnp.bfloat16)
    adj = jnp.maximum(adj, jnp.eye(N, dtype=jnp.bfloat16))

    # "graph.in_degrees()" stand-in, passed to the wrapper.
    in_deg = jnp.sum(adj.astype(jnp.float32), axis=1)

    feat = jax.random.normal(k_feat, (N, IN_FEATS), dtype=jnp.float32)

    # Xavier-uniform weights; fc1 bias zeroed (as in reset_parameters), fc2
    # bias keeps a small nonzero init (the module never zeroes it).
    def xavier(kk, fan_out, fan_in):
        bound = (6.0 / (fan_in + fan_out)) ** 0.5
        return jax.random.uniform(kk, (fan_out, fan_in), jnp.float32,
                                  -bound, bound)

    w1 = xavier(k_w1, HIDDEN_FEATS, IN_FEATS)    # fc1.weight (H, F)
    b1 = jnp.zeros((HIDDEN_FEATS,), jnp.float32)
    w2 = xavier(k_w2, OUT_FEATS, HIDDEN_FEATS)   # fc2.weight (O, H)
    b2 = 0.1 * jax.random.normal(k_b2, (OUT_FEATS,), dtype=jnp.float32)

    ref = _reference(adj, feat, w1, b1, w2, b2, in_deg)

    # Small tiles for the small demo graph (defaults are sized for big graphs):
    # npad=256 -> prop grid (4 row tiles x 2 reduction tiles).  Exercise both
    # the VMEM-resident-hn path (v5e/v6e/moderate graphs) and the streamed-hn
    # path (very large graphs on v7x).
    for resident in (True, False):
        out = sgc_layer2_forward(adj, feat, w1, b1, w2, b2, in_degrees=in_deg,
                                 tm=64, tk=128, hn_resident=resident)
        out = jax.block_until_ready(out)
        assert out.shape == (N, OUT_FEATS)
        # bf16 MXU feeds + bf16 inter-round storage with f32 accumulation ->
        # loosened tolerance vs. the pure-f32 reference.
        assert jnp.allclose(out, ref, atol=5e-2, rtol=5e-2), (
            resident, float(jnp.max(jnp.abs(out - ref))))

    print("KERNEL_OK")
</pallas_src>

<mosaic_0001>
module attributes {stable_mosaic.version = 11 : i64} {
  func.func @_project_scale_kernel(%arg0: i32, %arg1: memref<64x16xf32, #tpu.memory_space<vmem>>, %arg2: memref<16x128xf32, #tpu.memory_space<vmem>>, %arg3: memref<64x1xf32, #tpu.memory_space<vmem>>, %arg4: memref<64x128xbf16, #tpu.memory_space<vmem>>) attributes {dimension_semantics = [#tpu.dimension_semantics<parallel>], iteration_bounds = array<i64: 4>, scalar_prefetch = 0 : i64, scratch_operands = 0 : i64, tpu.core_type = #tpu.core_type<tc>, window_params = [{transform_indices = @transform_0, window_bounds = array<i64: 64, 16>}, {pipeline_mode = #tpu.pipeline_mode<synchronous>, transform_indices = @transform_1, window_bounds = array<i64: 16, 128>}, {transform_indices = @transform_2, window_bounds = array<i64: 64, 1>}, {transform_indices = @transform_3, window_bounds = array<i64: 64, 128>}]} {
    %c0 = arith.constant 0 : index
    %c0_0 = arith.constant 0 : index
    %0 = vector.load %arg1[%c0, %c0_0] : memref<64x16xf32, #tpu.memory_space<vmem>>, vector<64x16xf32>
    %c0_1 = arith.constant 0 : index
    %c0_2 = arith.constant 0 : index
    %1 = vector.load %arg2[%c0_1, %c0_2] : memref<16x128xf32, #tpu.memory_space<vmem>>, vector<16x128xf32>
    %cst = arith.constant dense<0.000000e+00> : vector<64x128xf32>
    %2 = tpu.matmul %0, %1, %cst {dimension_numbers = #tpu.dot_dimension_numbers<[1], [0], [0], [1], [0, 0, 1, 1], [], []>} : vector<64x16xf32>, vector<16x128xf32>, vector<64x128xf32> -> vector<64x128xf32>
    %c0_3 = arith.constant 0 : index
    %c0_4 = arith.constant 0 : index
    %3 = vector.load %arg3[%c0_3, %c0_4] : memref<64x1xf32, #tpu.memory_space<vmem>>, vector<64x1xf32>
    %4 = vector.broadcast %3 : vector<64x1xf32> to vector<64x128xf32>
    %5 = arith.mulf %2, %4 : vector<64x128xf32>
    %6 = arith.truncf %5 : vector<64x128xf32> to vector<64x128xbf16>
    %c0_5 = arith.constant 0 : index
    %c0_6 = arith.constant 0 : index
    %7 = vector.load %arg4[%c0_5, %c0_6] : memref<64x128xbf16, #tpu.memory_space<vmem>>, vector<64x128xbf16>
    tpu.vector_store %arg4[%c0_5, %c0_6], %6 {strides = array<i32>} : memref<64x128xbf16, #tpu.memory_space<vmem>>, vector<64x128xbf16>,
    return
  }
  func.func @transform_0(%arg0: i32) -> (i32, i32) {
    %c0_i32 = arith.constant 0 : i32
    %c0_i32_0 = arith.constant 0 : i32
    return %arg0, %c0_i32 : i32, i32
  }
  func.func @transform_1(%arg0: i32) -> (i32, i32) {
    %c0_i32 = arith.constant 0 : i32
    %c0_i32_0 = arith.constant 0 : i32
    %c0_i32_1 = arith.constant 0 : i32
    return %c0_i32, %c0_i32_0 : i32, i32
  }
  func.func @transform_2(%arg0: i32) -> (i32, i32) {
    %c0_i32 = arith.constant 0 : i32
    %c0_i32_0 = arith.constant 0 : i32
    return %arg0, %c0_i32 : i32, i32
  }
  func.func @transform_3(%arg0: i32) -> (i32, i32) {
    %c0_i32 = arith.constant 0 : i32
    %c0_i32_0 = arith.constant 0 : i32
    return %arg0, %c0_i32 : i32, i32
  }
}

</mosaic_0001>

<bundles_post_ra>
// kernel: tpu_custom_call.1
= control target key start
LH: loop header
LB: loop body
LE: loop exit
PB: predicated region body
PF: predicated region fallthrough
CT: control target
= control target key end

     0   :  { %8 = vsyncpa [#allocation3], 0  ;;  %s867_s0 = inlined_call_operand.vmem [shape: f32[256,16], index: 0, kind: input, shape index: {}]   ;;  %s868_s1 = inlined_call_operand.vmem [shape: f32[16,128], index: 1, kind: input, shape index: {}]   ;;  %s869_s2 = inlined_call_operand.vmem [shape: f32[256,1], index: 2, kind: input, shape index: {}]   ;;  %s870_s3 = inlined_call_operand.hbm [shape: bf16[256,128], index: 3, kind: output, shape index: {}]  }
   0x1   :  { %10 = vsyncpa [#allocation3 + $0x1], 0  ;;  %s744_s12 = smov 0   ;;  %s746_s13 = smov 0  }
   0x2   :  { %s748_s14 = smov 0   ;;  %s750_s15 = smov 0  }
   0x3 LB: > { %s765_s16 = sadd.s32 4294967295, %s718_s15   ;;  %s518_s17 = sadd.s32 4294967294, %s718_s15   ;;  %s718_s15 = sphi %s750_s15, %s876_s15   ;;  %s714_s14 = sphi %s748_s14, %s875_s14   ;;  %s710_s13 = sphi %s746_s13, %s874_s13   ;;  %s706_s12 = sphi %s744_s12, %s873_s12  }
   0x4   : > { %s769_s18 = sadd.s32 1, %s718_s15   ;;  %s96_s19 = sadd.s32 1, %s714_s14 }
   0x5   : > { %s93_s20 = ssub.s32 %s718_s15, %s769_s18  ;;  %p106_p0 = scmp.ne.s32.totalorder %s714_s14, %s710_s13 }
   0x6   : > { %p94_p1 = scmp.eq.s32.totalorder %s93_s20, 0  ;;  %p107_p2 = scmp.eq.s32.totalorder %s765_s16, 3 }
   0x7   : > { %p112_p3 = scmp.ne.s32.totalorder %s710_s13, %s706_s12  ;;  %p113_p4 = scmp.eq.s32.totalorder %s518_s17, 3 }
   0x8   : > { %s780_s21 = scalar_select %p94_p1, %s714_s14, %s96_s19  }
   0x9   : > { %p782_p5 = por %p107_p2, %p106_p0  ;;  %p786_p6 = por %p113_p4, %p112_p3 }
   0xa   : > { %p521_p7 = scmp.ge.s32.totalorder %s718_s15, 1  ;;  %p152_p8 = scmp.lt.s32.totalorder %s718_s15, 5 }
   0xc   : > { %p153_p9 = pnand %p521_p7, %p152_p8 }
   0xd   : > { %v202_v0 = vld [vmem:[%s868_s1] sm:$0xff] (!%p153_p9)  ;;  %v203_v1 = vld [vmem:[%s868_s1 + $0x8] sm:$0xff] (!%p153_p9)  ;;  %s523_s28 = sshll.u32 (!%p153_p9), %s765_s16, 3  ;;  %v720_v3 = vmov (!%p153_p9), 0   ;;  %vm204_vm0 = vcmask (!%p153_p9), 130048   ;;  %s178_s9 = sand.u32 (!%p153_p9), 1, %s710_s13  }
   0xe   : > { %156 = sbr.rel (%p153_p9) target bundleno = 263 (0x107), region = 32  ;;  %v606_v2 = vpack.c.bf16 (!%p153_p9), %v203_v1, %v202_v0  ;;  %p182_p10 = scmp.lt.s32.totalorder (!%p153_p9), %s523_s28, 31  ;;  %655 = vset.pattern.permute.xlu1 (!%p153_p9), %v720_v3  ;;  %654 = vset.pattern.permute.xlu0 (!%p153_p9), %v720_v3 }
   0xf   : > { %s522_s10 = sshll.u32 (!%p153_p9), %s178_s9, 5  ;;  %s556_s19 = sshll.u32 (!%p153_p9), %s765_s16, 9 }
  0x10   : > { %607 = vmatprep.subr.bf16.mxu0 (!%p153_p9), %v606_v2  ;;  %610 = vmatprep.subr.bf16.mxu1 (!%p153_p9), %v606_v2  ;;  %s180_s11 = scalar_lea.vmem (!%p153_p9), [#allocation2], %s522_s10  ;;  %s822_s25 = scalar_lea.hbm (!%p153_p9), %s870_s3, %s556_s19 }
  0x11   : > { %609 = vmatpush3.bf16.msra.mxu0 (!%p153_p9), %v606_v2  ;;  %611 = vmatpush3.bf16.msra.mxu1 (!%p153_p9), %v606_v2  ;;  %s444_s17 = sshll.u32 (!%p153_p9), %s180_s11, 4  ;;  %s826_s16 = scalar_lea.sflag (!%p153_p9), [#allocation3], %s178_s9  ;;  %s817_s17 = int_to_ptr.vmem [resolvable:$true] %s444_s17 }
  0x12   : > { %s656_s26 = scalar_lea.vmem (!%p153_p9), %s817_s17, 512  ;;  %s721_s27 = smov (!%p153_p9), [#allocation2]  }
  0x13   : > { %p657_p11 = scmp.ne.s32.totalorder (!%p153_p9), %s817_s17, %s656_s26 }
  0x15   : > { %s878_s28 = smov (!%p182_p10, %s523_s28), 31  ;;  %p658_p12 = pnand %p657_p11, %p782_p5 }
  0x16   : > { %s524_s29 = sshll.u32 %s878_s28, 3  ;;  %s660_s28 = sshll.u32 %s721_s27, 4  ;;  %s661_s28 = int_to_ptr.vmem [resolvable:$false] %s660_s28 }
  0x17   : > { %s185_s5 = scalar_lea.vmem %s867_s0, %s524_s29  ;;  %s191_s8 = scalar_lea.vmem %s869_s2, %s524_s29 }
  0x18   : > { %v194_v4 = vld [vmem:[%s185_s5] sm:$0xff]  ;;  %v195_v6 = vld [vmem:[%s185_s5 + $0x8] sm:$0xff]  ;;  %v196_v8 = vld [vmem:[%s185_s5 + $0x10] sm:$0xff]  ;;  %p659_p13 = pneg %p658_p12  ;;  %s662_s29 = scalar_lea.vmem %s661_s28, 1024 }
  0x19   : > { %v198_v5 = vld [vmem:[%s185_s5 + $0x20] sm:$0xff]  ;;  %594 = vmatprep.mubr.msk.f32.mxu0 %vm204_vm0, %v194_v4  ;;  %v199_v7 = vld [vmem:[%s185_s5 + $0x28] sm:$0xff]  ;;  %v200_v9 = vld [vmem:[%s185_s5 + $0x30] sm:$0xff]  ;;  %p663_p0 = scmp.lt.s32.totalorder %s817_s17, %s661_s28  ;;  %p664_p1 = scmp.lt.s32.totalorder %s662_s29, %s656_s26 }
  0x1a   : > { %600 = vmatprep.mubr.msk.f32.mxu1 %vm204_vm0, %v198_v5  ;;  %595 = vmatmul.mubr.msk.f32.vlgmr.msra.gmra.mrb[0].mxu0 %vm204_vm0, %v195_v6  ;;  %v336_v10 = vld [vmem:[%s191_s8 + $0x10] sm:$0xff]  ;;  %v197_v11 = vld [vmem:[%s185_s5 + $0x18] sm:$0xff]  ;;  %v334_v13 = vld [vmem:[%s191_s8] sm:$0xff] }
  0x1b   : > { %601 = vmatmul.mubr.msk.f32.vlgmr.msra.gmra.mrb[0].mxu1 %vm204_vm0, %v199_v7  ;;  %597 = vmatprep.mubr.msk.f32.mxu0 %vm204_vm0, %v196_v8  ;;  %v201_v12 = vld [vmem:[%s185_s5 + $0x38] sm:$0xff]  ;;  %v335_v15 = vld [vmem:[%s191_s8 + $0x8] sm:$0xff]  ;;  %v338_v17 = vld [vmem:[%s191_s8 + $0x20] sm:$0xff]  ;;  %p665_p2 = por %p664_p1, %p663_p0 }
  0x1c   : > { %603 = vmatprep.mubr.msk.f32.mxu1 %vm204_vm0, %v200_v9  ;;  %354 = vperm.xlu1 %655, %v336_v10   ;;  %v337_v14 = vld [vmem:[%s191_s8 + $0x18] sm:$0xff]  ;;  %v339_v16 = vld [vmem:[%s191_s8 + $0x28] sm:$0xff]  ;;  %v340_v19 = vld [vmem:[%s191_s8 + $0x30] sm:$0xff] }
  0x1d   : > { %344 = vperm.xlu0 %654, %v334_v13   ;;  %v341_v18 = vld [vmem:[%s191_s8 + $0x38] sm:$0xff]  ;;  %p666_p3 = pnand %p665_p2, %p659_p13 }
  0x1e   : > { %598 = vmatmul.mubr.msk.f32.gmra.mrb[2].mxu0 %vm204_vm0, %v197_v11 }
  0x1f   : > { %604 = vmatmul.mubr.msk.f32.gmra.mrb[2].mxu1 %vm204_vm0, %v201_v12 }
  0x20   : > { %359 = vperm.xlu1 %655, %v337_v14  }
  0x21   : > { %349 = vperm.xlu0 %654, %v335_v15  }
  0x24   : > { %369 = vperm.xlu1 %655, %v339_v16  }
  0x25   : > { %364 = vperm.xlu0 %654, %v338_v17  }
  0x28   : > { %379 = vperm.xlu1 %655, %v341_v18  }
  0x29   : > { %374 = vperm.xlu0 %654, %v340_v19  }
  0x9b   : > { %v355_v20 = vpop.permute.xlu1 %354 }
  0x9c   : > { %v345_v21 = vpop.permute.xlu0 %344 }
  0x9f   : > { %v360_v22 = vpop.permute.xlu1 %359 }
  0xa0   : > { %v350_v23 = vpop.permute.xlu0 %349 }
  0xa3   : > { %v370_v24 = vpop.permute.xlu1 %369 }
  0xa4   : > { %v365_v25 = vpop.permute.xlu0 %364 }
  0xa7   : > { %v380_v34 = vpop.permute.xlu1 %379 }
  0xa8   : > { %v375_v35 = vpop.permute.xlu0 %374 }
  0xed   : > { %v596_v26 = vpop.f32.mrb[0].mxu0 }
  0xee   : > { %v602_v27 = vpop.f32.mrb[0].mxu1  ;;  %v383_v28 = vmul.f32 %v596_v26, %v350_v23  ;;  %v295_v30 = vpop.f32.mrb[1].mxu0 }
  0xef   : > { %v387_v29 = vmul.f32 %v602_v27, %v370_v24  ;;  %v315_v31 = vpop.f32.mrb[1].mxu1  ;;  %v382_v32 = vmul.f32 %v345_v21, %v295_v30 }
  0xf0   : > { %v386_v33 = vmul.f32 %v365_v25, %v315_v31 }
  0xf1   : > { %v560_v36 = vpack.c.bf16 %v383_v28, %v382_v32  ;;  %v599_v38 = vpop.f32.mrb[2].mxu0 }
  0xf2   : > { %v570_v37 = vpack.c.bf16 %v387_v29, %v386_v33  ;;  %v605_v39 = vpop.f32.mrb[2].mxu1  ;;  %v385_v40 = vmul.f32 %v599_v38, %v360_v22  ;;  %v305_v42 = vpop.f32.mrb[3].mxu0 }
  0xf3   : > { %v389_v41 = vmul.f32 %v605_v39, %v380_v34  ;;  %v325_v43 = vpop.f32.mrb[3].mxu1  ;;  %561 = vst [vmem:[%s180_s11] sm:$0xff] %v560_v36   ;;  %v384_v44 = vmul.f32 %v355_v20, %v305_v42 }
  0xf4   : > { %578 = vst [vmem:[%s180_s11 + $0x10] sm:$0xff] %v570_v37   ;;  %v388_v45 = vmul.f32 %v375_v35, %v325_v43 }
  0xf5   : > { %v565_v46 = vpack.c.bf16 %v385_v40, %v384_v44 }
  0xf6   : > { %v575_v47 = vpack.c.bf16 %v389_v41, %v388_v45 }
  0xf7   : > { %577 = vst [vmem:[%s180_s11 + $0x8] sm:$0xff] %v565_v46  }
  0xf8   : > { %579 = vst [vmem:[%s180_s11 + $0x18] sm:$0xff] %v575_v47  }
  0xf9   : > { %669 = shalt.err (!%p666_p3)
}
  0xfa   : > { %s670_s30 = scalar_lea.hbm %s822_s25, 512  ;;  %s674_s6 = scalar_lea.hbm %s870_s3, 2048 }
  0xfb   : > { %p671_p4 = scmp.ne.s32.totalorder %s822_s25, %s670_s30  ;;  %p675_p9 = scmp.lt.u32.totalorder %s822_s25, %s870_s3 }
  0xfc   : > { %p676_p10 = scmp.lt.u32.totalorder %s674_s6, %s670_s30  ;;  %p678_p12 = scmp.lt.u32.totalorder %s670_s30, %s822_s25 }
  0xfd   : > { %p672_p7 = pnand %p671_p4, %p782_p5 }
  0xfe   : > { %p677_p11 = por %p676_p10, %p675_p9 }
  0xff   : > { %p673_p8 = pneg %p672_p7 }
 0x100   : > { %p679_p13 = por %p678_p12, %p677_p11 }
 0x102   : > { %p680_p0 = pnand %p679_p13, %p673_p8 }
 0x104   : > { %683 = shalt.err (!%p680_p0)
}
 0x105   : > { %s722_s9 = smov 64   ;;  %s723_s10 = smov 4  }
 0x106   : > { %612 = dma.vmem_to_hbm [thread:$0]  (%p782_p5), %s817_s17, 512, %s822_s25, %s826_s16, %s722_s9, %s722_s9, %s723_s10  }
 0x107 PF: > { %p618_p1 = scmp.ge.s32.totalorder %s718_s15, 2  ;;  %s459_s11 = sand.u32 1, %s706_s12  }
 0x108   : > { %s460_s19 = scalar_lea.sflag [#allocation3], %s459_s11 }
 0x109   : > { %p615_p2 = pnand %p618_p1, %p786_p6 }
 0x10b   : > { %701 = dma.done.wait (!%p615_p2), %s460_s19, 512  }
 0x10c   : > { %703 = vsyncadd (!%p615_p2), %s460_s19, 4294966784  ;;  %p13_p3 = scmp.ge.s32.totalorder %s769_s18, 6   ;;  %s873_s12 = smov %s710_s13 }
 0x10d   : > { %s874_s13 = smov %s714_s14  ;;  %s875_s14 = smov %s780_s21 }
 0x10e   : > { %s876_s15 = smov %s769_s18  ;;  %15 = sbr.rel (!%p13_p3) target bundleno = 3 (0x3), region = 70 }
 0x115   :  { %465 = vsyncpa [#allocation3], 1 }
 0x116   :  { %467 = vsyncpa [#allocation3 + $0x1], 1 }

</bundles_post_ra>
